<compile_context>
chip_gen: v7x
topology: tpu7x:2x2x1
jax: 0.10.0
libtpu: 0.0.40
codegen_flags: <defaults>
</compile_context>

<pallas_src>
import jax
import jax.numpy as jnp
import numpy as np
from jax.experimental import pallas as pl
from jax.experimental.pallas import tpu as pltpu

BN_EPS = 1e-5
OUT_W = 384   # [x_rec pad128 | mu pad128 | logvar pad128]


def vae_forward_kernel(
    x_ref, eps_ref,
    w1_ref, whead_ref, w3_ref, w4_ref,
    hrow_ref, srow_ref,
    out_ref,
):
    x = x_ref[...]          # (B, F) f32, current mini-batch
    eps = eps_ref[...]      # (B, E) f32
    E = eps.shape[1]

    # unpack fused bias/affine rows (static, tile-aligned slices)
    b1 = hrow_ref[0:1, :]          # (1, H)
    gamma = hrow_ref[1:2, :]       # (1, H)
    beta = hrow_ref[2:3, :]        # (1, H)
    b3 = hrow_ref[3:4, :]          # (1, H)
    b_head = srow_ref[0:1, :]      # (1, 256)  bmu @ lanes [0:E], blv @ [128:128+E]
    b4 = srow_ref[1:2, 0:128]      # (1, 128)  b4 @ lanes [0:F]

    # ---- encode: layer1 (bf16 MXU, f32 acc) -> batchnorm1d (f32) -> relu ----
    h = jnp.dot(x.astype(jnp.bfloat16), w1_ref[...],
                preferred_element_type=jnp.float32) + b1          # (B, H) f32
    mean = jnp.mean(h, axis=0, keepdims=True)
    var = jnp.maximum(jnp.mean(h * h, axis=0, keepdims=True) - mean * mean, 0.0)
    scale = gamma * jax.lax.rsqrt(var + BN_EPS)                   # gamma folded in
    h = jnp.maximum((h - mean) * scale + beta, 0.0)

    # ---- fused, lane-tile-aligned mu|logvar head: one (H, 256) matmul ----
    mulv = jnp.dot(h.astype(jnp.bfloat16), whead_ref[...],
                   preferred_element_type=jnp.float32) + b_head   # (B, 256) f32
    mu = mulv[:, 0:E]
    logvar = mulv[:, 128:128 + E]   # 128-aligned view -> lines up with eps lanes

    # ---- reparameterize (f32) ----
    z = mu + eps * jnp.exp(0.5 * logvar)                          # (B, E)

    # ---- decode: layer3 -> relu -> layer4 (padded to 128 lanes) -> sigmoid ----
    z1 = jnp.maximum(jnp.dot(z.astype(jnp.bfloat16), w3_ref[...],
                             preferred_element_type=jnp.float32) + b3, 0.0)
    z2 = jnp.dot(z1.astype(jnp.bfloat16), w4_ref[...],
                 preferred_element_type=jnp.float32) + b4         # (B, 128)
    x_rec = 0.5 * (jnp.tanh(0.5 * z2) + 1.0)   # numerically stable sigmoid (EUP)

    # single output slab, both stores 128-lane aligned and unmasked
    out_ref[:, 0:128] = x_rec
    out_ref[:, 128:384] = mulv


def pack_params(params):
    """One-time repack of module parameters into the kernel's fused layout."""
    E = params["wmu"].shape[1]
    F = params["w4"].shape[1]
    H = params["w1"].shape[1]

    # fused head: mu weights at lanes [0:E], logvar weights at lanes [128:128+E]
    w_head = jnp.zeros((H, 256), jnp.float32)
    w_head = w_head.at[:, 0:E].set(params["wmu"])
    w_head = w_head.at[:, 128:128 + E].set(params["wlv"])
    b_head = jnp.zeros((1, 256), jnp.float32)
    b_head = b_head.at[:, 0:E].set(params["bmu"])
    b_head = b_head.at[:, 128:128 + E].set(params["blv"])

    # layer4 padded to 128 output lanes (x_rec occupies lanes [0:F])
    w4p = jnp.zeros((H, 128), jnp.float32).at[:, 0:F].set(params["w4"])
    b4p = jnp.zeros((1, 128), jnp.float32).at[:, 0:F].set(params["b4"])

    hrows = jnp.concatenate(
        [params["b1"], params["gamma"], params["beta"], params["b3"]], axis=0)  # (4, H)
    srows = jnp.concatenate(
        [b_head, jnp.pad(b4p, ((0, 0), (0, 128)))], axis=0)                     # (2, 256)

    return {
        # MXU operands stored bf16 (halves resident weight bytes & vld traffic)
        "w1": params["w1"].astype(jnp.bfloat16),        # (F, H)
        "w_head": w_head.astype(jnp.bfloat16),          # (H, 256)
        "w3": params["w3"].astype(jnp.bfloat16),        # (E, H)
        "w4": w4p.astype(jnp.bfloat16),                 # (H, 128)
        # bias/affine rows stay f32 (BN / elementwise math is f32)
        "hrows": hrows, "srows": srows,
        "E": E, "F": F,
    }


def vae_forward(x, eps, packed):
    """x: (N, B, F) f32, eps: (N, B, E) f32, packed = pack_params(...).

    Processes N independent mini-batches in one pallas_call: grid=(N,).
    BatchNorm1d statistics are computed per mini-batch, exactly like N
    separate training-mode module calls. Weights use constant index_maps so
    they are DMA'd once and stay VMEM-resident; per-step x/eps/out blocks are
    auto double-buffered by the pipeline."""
    N, B, F = x.shape
    _, _, E = eps.shape
    assert F == packed["F"] and E == packed["E"]

    per_step = lambda n: (n, 0, 0)       # mini-batch n
    resident = lambda n: (0, 0)          # same block every step -> stays in VMEM

    out = pl.pallas_call(
        vae_forward_kernel,
        out_shape=jax.ShapeDtypeStruct((N, B, OUT_W), jnp.float32),
        grid=(N,),
        in_specs=[
            pl.BlockSpec((pl.Squeezed(), B, F), per_step),          # x
            pl.BlockSpec((pl.Squeezed(), B, E), per_step),          # eps
            pl.BlockSpec(packed["w1"].shape, resident),             # w1
            pl.BlockSpec(packed["w_head"].shape, resident),         # w_head
            pl.BlockSpec(packed["w3"].shape, resident),             # w3
            pl.BlockSpec(packed["w4"].shape, resident),             # w4 (padded)
            pl.BlockSpec(packed["hrows"].shape, resident),          # b1|gamma|beta|b3
            pl.BlockSpec(packed["srows"].shape, resident),          # b_head|b4
        ],
        out_specs=pl.BlockSpec((pl.Squeezed(), B, OUT_W), per_step),
        compiler_params=pltpu.CompilerParams(
            dimension_semantics=("parallel",)),   # shard mini-batches across TCs (v7x)
    )(x, eps, packed["w1"], packed["w_head"], packed["w3"], packed["w4"],
      packed["hrows"], packed["srows"])

    x_rec = out[..., 0:F]
    mu = out[..., 128:128 + E]
    logvar = out[..., 256:256 + E]
    return x_rec, mu, logvar


def init_params(key, num_features, hidden_layer, encoded_dims):
    """Deterministic synthetic init (shapes match the PyTorch module)."""
    ks = jax.random.split(key, 10)

    def lin(kw, kb, fan_in, fan_out):
        bound = 1.0 / jnp.sqrt(fan_in)
        w = jax.random.uniform(kw, (fan_in, fan_out), jnp.float32, -bound, bound)
        b = jax.random.uniform(kb, (1, fan_out), jnp.float32, -bound, bound)
        return w, b

    w1, b1 = lin(ks[0], ks[1], num_features, hidden_layer)
    wmu, bmu = lin(ks[2], ks[3], hidden_layer, encoded_dims)
    wlv, blv = lin(ks[4], ks[5], hidden_layer, encoded_dims)
    w3, b3 = lin(ks[6], ks[7], encoded_dims, hidden_layer)
    w4, b4 = lin(ks[8], ks[9], hidden_layer, num_features)

    return {
        "w1": w1, "b1": b1,
        "gamma": jnp.ones((1, hidden_layer), jnp.float32),   # BatchNorm1d weight
        "beta": jnp.zeros((1, hidden_layer), jnp.float32),   # BatchNorm1d bias
        "wmu": wmu, "bmu": bmu,
        "wlv": wlv, "blv": blv,
        "w3": w3, "b3": b3,
        "w4": w4, "b4": b4,
    }


def vae_forward_ref(x, eps, params):
    """Pure-JAX f32 reference of the PyTorch training-mode forward,
    applied independently to each of the N mini-batches."""
    def one(xb, eb):
        h = xb @ params["w1"] + params["b1"]
        mean = jnp.mean(h, axis=0, keepdims=True)
        var = jnp.mean((h - mean) ** 2, axis=0, keepdims=True)
        h = params["gamma"] * (h - mean) / jnp.sqrt(var + BN_EPS) + params["beta"]
        h = jnp.maximum(h, 0.0)
        mu = h @ params["wmu"] + params["bmu"]
        logvar = h @ params["wlv"] + params["blv"]
        z = mu + eb * jnp.exp(0.5 * logvar)
        z1 = jnp.maximum(z @ params["w3"] + params["b3"], 0.0)
        x_rec = jax.nn.sigmoid(z1 @ params["w4"] + params["b4"])
        return x_rec, mu, logvar
    return jax.vmap(one)(x, eps)


if __name__ == "__main__":
    # Shapes consistent with the module defaults:
    #   num_features=17 (layer_sizes[0]), hidden_layer=200, encoded_dimensions=11
    # N independent mini-batches of B rows each (BatchNorm stats per mini-batch).
    N, B, F, H, E = 4, 16, 17, 200, 11

    key = jax.random.PRNGKey(0)
    k_x, k_eps, k_p = jax.random.split(key, 3)

    x = jax.random.uniform(k_x, (N, B, F), jnp.float32)     # module applies sigmoid on recon
    eps = jax.random.normal(k_eps, (N, B, E), jnp.float32)  # reparameterization noise
    # TODO(synk): eps is supplied as an input (torch.randn_like done in-module);
    # an in-kernel pltpu.prng_* draw would avoid the extra input DMA.
    params = init_params(k_p, F, H, E)
    packed = pack_params(params)                             # one-time fused-layout repack

    x_rec, mu, logvar = vae_forward(x, eps, packed)
    jax.block_until_ready((x_rec, mu, logvar))

    assert x_rec.shape == (N, B, F) and mu.shape == (N, B, E) and logvar.shape == (N, B, E)

    # Sanity check against a pure-JAX f32 reference (loose tolerance covers the
    # bf16 MXU-operand path used inside the kernel).
    r_xrec, r_mu, r_lv = vae_forward_ref(x, eps, params)
    np.testing.assert_allclose(np.asarray(x_rec), np.asarray(r_xrec), rtol=5e-2, atol=5e-2)
    np.testing.assert_allclose(np.asarray(mu), np.asarray(r_mu), rtol=5e-2, atol=5e-2)
    np.testing.assert_allclose(np.asarray(logvar), np.asarray(r_lv), rtol=5e-2, atol=5e-2)

    print("KERNEL_OK")
</pallas_src>

<mosaic_0001>
module attributes {stable_mosaic.version = 11 : i64} {
  func.func @vae_forward_kernel(%arg0: i32, %arg1: memref<1x16x17xf32, #tpu.memory_space<vmem>>, %arg2: memref<1x16x11xf32, #tpu.memory_space<vmem>>, %arg3: memref<17x200xbf16, #tpu.memory_space<vmem>>, %arg4: memref<200x256xbf16, #tpu.memory_space<vmem>>, %arg5: memref<11x200xbf16, #tpu.memory_space<vmem>>, %arg6: memref<200x128xbf16, #tpu.memory_space<vmem>>, %arg7: memref<4x200xf32, #tpu.memory_space<vmem>>, %arg8: memref<2x256xf32, #tpu.memory_space<vmem>>, %arg9: memref<1x16x384xf32, #tpu.memory_space<vmem>>) attributes {dimension_semantics = [#tpu.dimension_semantics<parallel>], iteration_bounds = array<i64: 4>, scalar_prefetch = 0 : i64, scratch_operands = 0 : i64, tpu.core_type = #tpu.core_type<tc>, window_params = [{transform_indices = @transform_0, window_bounds = array<i64: 1, 16, 17>}, {transform_indices = @transform_1, window_bounds = array<i64: 1, 16, 11>}, {pipeline_mode = #tpu.pipeline_mode<synchronous>, transform_indices = @transform_2, window_bounds = array<i64: 17, 200>}, {pipeline_mode = #tpu.pipeline_mode<synchronous>, transform_indices = @transform_3, window_bounds = array<i64: 200, 256>}, {pipeline_mode = #tpu.pipeline_mode<synchronous>, transform_indices = @transform_4, window_bounds = array<i64: 11, 200>}, {pipeline_mode = #tpu.pipeline_mode<synchronous>, transform_indices = @transform_5, window_bounds = array<i64: 200, 128>}, {pipeline_mode = #tpu.pipeline_mode<synchronous>, transform_indices = @transform_6, window_bounds = array<i64: 4, 200>}, {pipeline_mode = #tpu.pipeline_mode<synchronous>, transform_indices = @transform_7, window_bounds = array<i64: 2, 256>}, {transform_indices = @transform_8, window_bounds = array<i64: 1, 16, 384>}]} {
    %c0 = arith.constant 0 : index
    %c0_0 = arith.constant 0 : index
    %c0_1 = arith.constant 0 : index
    %0 = vector.load %arg1[%c0, %c0_0, %c0_1] : memref<1x16x17xf32, #tpu.memory_space<vmem>>, vector<1x16x17xf32>
    %1 = vector.shape_cast %0 : vector<1x16x17xf32> to vector<16x17xf32>
    %c0_2 = arith.constant 0 : index
    %c0_3 = arith.constant 0 : index
    %c0_4 = arith.constant 0 : index
    %2 = vector.load %arg2[%c0_2, %c0_3, %c0_4] : memref<1x16x11xf32, #tpu.memory_space<vmem>>, vector<1x16x11xf32>
    %3 = vector.shape_cast %2 : vector<1x16x11xf32> to vector<16x11xf32>
    %c0_5 = arith.constant 0 : index
    %c0_6 = arith.constant 0 : index
    %4 = vector.load %arg7[%c0_5, %c0_6] : memref<4x200xf32, #tpu.memory_space<vmem>>, vector<1x200xf32>
    %c1 = arith.constant 1 : index
    %c0_7 = arith.constant 0 : index
    %5 = vector.load %arg7[%c1, %c0_7] : memref<4x200xf32, #tpu.memory_space<vmem>>, vector<1x200xf32>
    %c2 = arith.constant 2 : index
    %c0_8 = arith.constant 0 : index
    %6 = vector.load %arg7[%c2, %c0_8] : memref<4x200xf32, #tpu.memory_space<vmem>>, vector<1x200xf32>
    %c3 = arith.constant 3 : index
    %c0_9 = arith.constant 0 : index
    %7 = vector.load %arg7[%c3, %c0_9] : memref<4x200xf32, #tpu.memory_space<vmem>>, vector<1x200xf32>
    %c0_10 = arith.constant 0 : index
    %c0_11 = arith.constant 0 : index
    %8 = vector.load %arg8[%c0_10, %c0_11] : memref<2x256xf32, #tpu.memory_space<vmem>>, vector<1x256xf32>
    %c1_12 = arith.constant 1 : index
    %c0_13 = arith.constant 0 : index
    %9 = vector.load %arg8[%c1_12, %c0_13] : memref<2x256xf32, #tpu.memory_space<vmem>>, vector<1x128xf32>
    %10 = arith.truncf %1 : vector<16x17xf32> to vector<16x17xbf16>
    %c0_14 = arith.constant 0 : index
    %c0_15 = arith.constant 0 : index
    %11 = vector.load %arg3[%c0_14, %c0_15] : memref<17x200xbf16, #tpu.memory_space<vmem>>, vector<17x200xbf16>
    %cst = arith.constant dense<0.000000e+00> : vector<16x200xf32>
    %12 = tpu.matmul %10, %11, %cst {dimension_numbers = #tpu.dot_dimension_numbers<[1], [0], [0], [1], [0, 0, 1, 1], [], []>} : vector<16x17xbf16>, vector<17x200xbf16>, vector<16x200xf32> -> vector<16x200xf32>
    %13 = vector.broadcast %4 : vector<1x200xf32> to vector<16x200xf32>
    %14 = arith.addf %12, %13 : vector<16x200xf32>
    %cst_16 = arith.constant dense<0.000000e+00> : vector<200xf32>
    %15 = vector.multi_reduction <add>, %14, %cst_16 [0] : vector<16x200xf32> to vector<200xf32>
    %16 = vector.shape_cast %15 : vector<200xf32> to vector<1x200xf32>
    %cst_17 = arith.constant 1.600000e+01 : f32
    %17 = vector.broadcast %cst_17 : f32 to vector<1x200xf32>
    %18 = arith.divf %16, %17 : vector<1x200xf32>
    %19 = arith.mulf %14, %14 : vector<16x200xf32>
    %cst_18 = arith.constant dense<0.000000e+00> : vector<200xf32>
    %20 = vector.multi_reduction <add>, %19, %cst_18 [0] : vector<16x200xf32> to vector<200xf32>
    %21 = vector.shape_cast %20 : vector<200xf32> to vector<1x200xf32>
    %cst_19 = arith.constant 1.600000e+01 : f32
    %22 = vector.broadcast %cst_19 : f32 to vector<1x200xf32>
    %23 = arith.divf %21, %22 : vector<1x200xf32>
    %24 = arith.mulf %18, %18 : vector<1x200xf32>
    %25 = arith.subf %23, %24 : vector<1x200xf32>
    %cst_20 = arith.constant 0.000000e+00 : f32
    %26 = vector.broadcast %cst_20 : f32 to vector<1x200xf32>
    %27 = arith.maximumf %25, %26 : vector<1x200xf32>
    %cst_21 = arith.constant 9.99999974E-6 : f32
    %28 = vector.broadcast %cst_21 : f32 to vector<1x200xf32>
    %29 = arith.addf %27, %28 : vector<1x200xf32>
    %30 = math.rsqrt %29 : vector<1x200xf32>
    %31 = arith.mulf %5, %30 : vector<1x200xf32>
    %32 = vector.broadcast %18 : vector<1x200xf32> to vector<16x200xf32>
    %33 = arith.subf %14, %32 : vector<16x200xf32>
    %34 = vector.broadcast %31 : vector<1x200xf32> to vector<16x200xf32>
    %35 = arith.mulf %33, %34 : vector<16x200xf32>
    %36 = vector.broadcast %6 : vector<1x200xf32> to vector<16x200xf32>
    %37 = arith.addf %35, %36 : vector<16x200xf32>
    %cst_22 = arith.constant 0.000000e+00 : f32
    %38 = vector.broadcast %cst_22 : f32 to vector<16x200xf32>
    %39 = arith.maximumf %37, %38 : vector<16x200xf32>
    %40 = arith.truncf %39 : vector<16x200xf32> to vector<16x200xbf16>
    %c0_23 = arith.constant 0 : index
    %c0_24 = arith.constant 0 : index
    %41 = vector.load %arg4[%c0_23, %c0_24] : memref<200x256xbf16, #tpu.memory_space<vmem>>, vector<200x256xbf16>
    %cst_25 = arith.constant dense<0.000000e+00> : vector<16x256xf32>
    %42 = tpu.matmul %40, %41, %cst_25 {dimension_numbers = #tpu.dot_dimension_numbers<[1], [0], [0], [1], [0, 0, 1, 1], [], []>} : vector<16x200xbf16>, vector<200x256xbf16>, vector<16x256xf32> -> vector<16x256xf32>
    %43 = vector.broadcast %8 : vector<1x256xf32> to vector<16x256xf32>
    %44 = arith.addf %42, %43 : vector<16x256xf32>
    %45 = vector.extract_strided_slice %44 {offsets = [0, 0], sizes = [16, 11], strides = [1, 1]} : vector<16x256xf32> to vector<16x11xf32>
    %46 = vector.extract_strided_slice %44 {offsets = [0, 128], sizes = [16, 11], strides = [1, 1]} : vector<16x256xf32> to vector<16x11xf32>
    %cst_26 = arith.constant 5.000000e-01 : f32
    %47 = vector.broadcast %cst_26 : f32 to vector<16x11xf32>
    %48 = arith.mulf %47, %46 : vector<16x11xf32>
    %49 = math.exp %48 : vector<16x11xf32>
    %50 = arith.mulf %3, %49 : vector<16x11xf32>
    %51 = arith.addf %45, %50 : vector<16x11xf32>
    %52 = arith.truncf %51 : vector<16x11xf32> to vector<16x11xbf16>
    %c0_27 = arith.constant 0 : index
    %c0_28 = arith.constant 0 : index
    %53 = vector.load %arg5[%c0_27, %c0_28] : memref<11x200xbf16, #tpu.memory_space<vmem>>, vector<11x200xbf16>
    %cst_29 = arith.constant dense<0.000000e+00> : vector<16x200xf32>
    %54 = tpu.matmul %52, %53, %cst_29 {dimension_numbers = #tpu.dot_dimension_numbers<[1], [0], [0], [1], [0, 0, 1, 1], [], []>} : vector<16x11xbf16>, vector<11x200xbf16>, vector<16x200xf32> -> vector<16x200xf32>
    %55 = vector.broadcast %7 : vector<1x200xf32> to vector<16x200xf32>
    %56 = arith.addf %54, %55 : vector<16x200xf32>
    %cst_30 = arith.constant 0.000000e+00 : f32
    %57 = vector.broadcast %cst_30 : f32 to vector<16x200xf32>
    %58 = arith.maximumf %56, %57 : vector<16x200xf32>
    %59 = arith.truncf %58 : vector<16x200xf32> to vector<16x200xbf16>
    %c0_31 = arith.constant 0 : index
    %c0_32 = arith.constant 0 : index
    %60 = vector.load %arg6[%c0_31, %c0_32] : memref<200x128xbf16, #tpu.memory_space<vmem>>, vector<200x128xbf16>
    %cst_33 = arith.constant dense<0.000000e+00> : vector<16x128xf32>
    %61 = tpu.matmul %59, %60, %cst_33 {dimension_numbers = #tpu.dot_dimension_numbers<[1], [0], [0], [1], [0, 0, 1, 1], [], []>} : vector<16x200xbf16>, vector<200x128xbf16>, vector<16x128xf32> -> vector<16x128xf32>
    %62 = vector.broadcast %9 : vector<1x128xf32> to vector<16x128xf32>
    %63 = arith.addf %61, %62 : vector<16x128xf32>
    %cst_34 = arith.constant 5.000000e-01 : f32
    %64 = vector.broadcast %cst_34 : f32 to vector<16x128xf32>
    %65 = arith.mulf %64, %63 : vector<16x128xf32>
    %66 = math.tanh %65 : vector<16x128xf32>
    %cst_35 = arith.constant 1.000000e+00 : f32
    %67 = vector.broadcast %cst_35 : f32 to vector<16x128xf32>
    %68 = arith.addf %66, %67 : vector<16x128xf32>
    %cst_36 = arith.constant 5.000000e-01 : f32
    %69 = vector.broadcast %cst_36 : f32 to vector<16x128xf32>
    %70 = arith.mulf %69, %68 : vector<16x128xf32>
    %c0_37 = arith.constant 0 : index
    %c0_38 = arith.constant 0 : index
    %c0_39 = arith.constant 0 : index
    %71 = vector.load %arg9[%c0_37, %c0_38, %c0_39] : memref<1x16x384xf32, #tpu.memory_space<vmem>>, vector<1x16x128xf32>
    %72 = vector.shape_cast %71 : vector<1x16x128xf32> to vector<16x128xf32>
    %73 = vector.shape_cast %70 : vector<16x128xf32> to vector<1x16x128xf32>
    tpu.vector_store %arg9[%c0_37, %c0_38, %c0_39], %73 {strides = array<i32>} : memref<1x16x384xf32, #tpu.memory_space<vmem>>, vector<1x16x128xf32>,
    %c0_40 = arith.constant 0 : index
    %c0_41 = arith.constant 0 : index
    %c128 = arith.constant 128 : index
    %74 = vector.load %arg9[%c0_40, %c0_41, %c128] : memref<1x16x384xf32, #tpu.memory_space<vmem>>, vector<1x16x256xf32>
    %75 = vector.shape_cast %74 : vector<1x16x256xf32> to vector<16x256xf32>
    %76 = vector.shape_cast %44 : vector<16x256xf32> to vector<1x16x256xf32>
    tpu.vector_store %arg9[%c0_40, %c0_41, %c128], %76 {strides = array<i32>} : memref<1x16x384xf32, #tpu.memory_space<vmem>>, vector<1x16x256xf32>,
    return
  }
  func.func @transform_0(%arg0: i32) -> (i32, i32, i32) {
    %c0_i32 = arith.constant 0 : i32
    %c0_i32_0 = arith.constant 0 : i32
    %c0_i32_1 = arith.constant 0 : i32
    return %arg0, %c0_i32, %c0_i32_0 : i32, i32, i32
  }
  func.func @transform_1(%arg0: i32) -> (i32, i32, i32) {
    %c0_i32 = arith.constant 0 : i32
    %c0_i32_0 = arith.constant 0 : i32
    %c0_i32_1 = arith.constant 0 : i32
    return %arg0, %c0_i32, %c0_i32_0 : i32, i32, i32
  }
  func.func @transform_2(%arg0: i32) -> (i32, i32) {
    %c0_i32 = arith.constant 0 : i32
    %c0_i32_0 = arith.constant 0 : i32
    %c0_i32_1 = arith.constant 0 : i32
    return %c0_i32, %c0_i32_0 : i32, i32
  }
  func.func @transform_3(%arg0: i32) -> (i32, i32) {
    %c0_i32 = arith.constant 0 : i32
    %c0_i32_0 = arith.constant 0 : i32
    %c0_i32_1 = arith.constant 0 : i32
    return %c0_i32, %c0_i32_0 : i32, i32
  }
  func.func @transform_4(%arg0: i32) -> (i32, i32) {
    %c0_i32 = arith.constant 0 : i32
    %c0_i32_0 = arith.constant 0 : i32
    %c0_i32_1 = arith.constant 0 : i32
    return %c0_i32, %c0_i32_0 : i32, i32
  }
  func.func @transform_5(%arg0: i32) -> (i32, i32) {
    %c0_i32 = arith.constant 0 : i32
    %c0_i32_0 = arith.constant 0 : i32
    %c0_i32_1 = arith.constant 0 : i32
    return %c0_i32, %c0_i32_0 : i32, i32
  }
  func.func @transform_6(%arg0: i32) -> (i32, i32) {
    %c0_i32 = arith.constant 0 : i32
    %c0_i32_0 = arith.constant 0 : i32
    %c0_i32_1 = arith.constant 0 : i32
    return %c0_i32, %c0_i32_0 : i32, i32
  }
  func.func @transform_7(%arg0: i32) -> (i32, i32) {
    %c0_i32 = arith.constant 0 : i32
    %c0_i32_0 = arith.constant 0 : i32
    %c0_i32_1 = arith.constant 0 : i32
    return %c0_i32, %c0_i32_0 : i32, i32
  }
  func.func @transform_8(%arg0: i32) -> (i32, i32, i32) {
    %c0_i32 = arith.constant 0 : i32
    %c0_i32_0 = arith.constant 0 : i32
    %c0_i32_1 = arith.constant 0 : i32
    return %arg0, %c0_i32, %c0_i32_0 : i32, i32, i32
  }
}

</mosaic_0001>

<bundles_post_ra>
// kernel: tpu_custom_call.1
= control target key start
LH: loop header
LB: loop body
LE: loop exit
PB: predicated region body
PF: predicated region fallthrough
CT: control target
= control target key end

     0   :  { %13 = vsyncpa [#allocation3], 0  ;;  %s2078_s0 = inlined_call_operand.hbm [shape: f32[4,16,17], index: 0, kind: input, shape index: {}]   ;;  %s2079_s1 = inlined_call_operand.vmem [shape: f32[4,16,11], index: 1, kind: input, shape index: {}]   ;;  %s2080_s2 = inlined_call_operand.vmem [shape: bf16[17,200], index: 2, kind: input, shape index: {}]   ;;  %s2081_s3 = inlined_call_operand.hbm [shape: bf16[200,256], index: 3, kind: input, shape index: {}]   ;;  %s2082_s4 = inlined_call_operand.hbm [shape: bf16[11,200], index: 4, kind: input, shape index: {}]   ;;  %s2083_s5 = inlined_call_operand.vmem [shape: bf16[200,128], index: 5, kind: input, shape index: {}]   ;;  %s2084_s6 = inlined_call_operand.hbm [shape: f32[4,200], index: 6, kind: input, shape index: {}]   ;;  %s2085_s7 = inlined_call_operand.vmem [shape: f32[2,256], index: 7, kind: input, shape index: {}]   ;;  %s2086_s8 = inlined_call_operand.hbm [shape: f32[4,16,384], index: 8, kind: output, shape index: {}]  }
   0x1   :  { %15 = vsyncpa [#allocation3 + $0x1], 0 }
   0x2   :  { %16 = vsyncpa [#allocation6], 0 }
   0x3   :  { %17 = vsyncpa [#allocation9], 0 }
   0x4   :  { %18 = vsyncpa [#allocation4], 0 }
   0x5   :  { %20 = vsyncpa [#allocation4 + $0x1], 0  ;;  %s1675_s27 = smov 0   ;;  %s1677_s28 = smov 0  }
   0x6   :  { %s1679_s29 = smov 0   ;;  %s1681_s30 = smov 0  }
   0x7 LB: > { %2092 = sst [smem:[#allocation15_spill]] %s1604_s27  ;;  %s1696_s9 = sadd.s32 4294967295, %s1616_s30   ;;  %s1616_s30 = sphi %s1681_s30, %s2114_s30   ;;  %s1612_s29 = sphi %s1679_s29, %s2113_s29   ;;  %s1608_s28 = sphi %s1677_s28, %s2112_s28   ;;  %s1604_s27 = sphi %s1675_s27, %s2111_s27  }
   0x8   : > { %s1199_s10 = sadd.s32 4294967294, %s1616_s30   ;;  %p46_p0 = scmp.ne.s32.totalorder %s1608_s28, %s1604_s27 }
   0x9   : > { %p2087_p1 = scmp.eq.s32.totalorder %s1696_s9, 0  ;;  %p228_p3 = scmp.eq.s32.totalorder %s1199_s10, 3 }
   0xa   : > { %p1200_p5 = scmp.ge.s32.totalorder %s1616_s30, 1  ;;  %p235_p7 = scmp.lt.s32.totalorder %s1616_s30, 5 }
   0xb   : > { %p1705_p4 = por %p2087_p1, %p46_p0  ;;  %p1710_p6 = por %p228_p3, %p46_p0 }
   0xc   : > { %p1715_p8 = pnand %p1200_p5, %p235_p7  ;;  %s1618_s14 = smov [#allocation5]  }
   0xd   : > { %s2093_s11 = scalar_select %p1705_p4, 1, 0 }
   0xe   : > { %s2094_s12 = scalar_select %p1710_p6, 1, 0 }
   0xf   : > { %s2096_s13 = scalar_select %p1715_p8, 1, 0 }
  0x10   : > { %2095 = sst [smem:[#allocation16_spill]] %s2094_s12  ;;  %s250_s15 = sshll.u32 %s1618_s14, 4  ;;  %s1719_s15 = int_to_ptr.vmem [resolvable:$true] %s250_s15 }
  0x11   : > { %p1289_p9 = pneg %p1715_p8  ;;  %s1619_s17 = smov [#allocation7]  }
  0x12   : > { %s263_s18 = sshll.u32 %s1619_s17, 4  ;;  %s1620_s19 = smov [#allocation8]   ;;  %s1729_s18 = int_to_ptr.vmem [resolvable:$true] %s263_s18 }
  0x13   : > { %p1725_p10 = pnand %p1289_p9, %p2087_p1  ;;  %s1731_s20 = sshll.u32 %s1620_s19, 4  ;;  %s281_s20 = int_to_ptr.vmem [resolvable:$true] %s1731_s20 }
  0x14   : > { %s1428_s23 = scalar_lea.hbm %s2081_s3, 3200 }
  0x15   : > { %p1429_p11 = scmp.ne.s32.totalorder %s2081_s3, %s1428_s23  ;;  %p1741_p12 = pneg %p1725_p10 }
  0x16   : > { %p1435_p3 = scmp.lt.u32.totalorder %s1428_s23, %s2081_s3 }
  0x17   : > { %p1431_p13 = pnand %p1741_p12, %p1429_p11 }
  0x19   : > { %p1432_p0 = pneg %p1431_p13 }
  0x1b   : > { %p1437_p5 = pnand %p1435_p3, %p1432_p0 }
  0x1d   : > { %1440 = shalt.err (!%p1437_p5)
}
  0x1e   : > { %s1441_s17 = scalar_lea.vmem %s1719_s15, 3200  ;;  %p1449_p2 = scmp.lt.s32.totalorder %s1719_s15, %s1719_s15 }
  0x1f   : > { %p1442_p7 = scmp.ne.s32.totalorder %s1719_s15, %s1441_s17  ;;  %p1450_p6 = scmp.lt.s32.totalorder %s1441_s17, %s1441_s17 }
  0x21   : > { %p1444_p9 = pnand %p1442_p7, %p1741_p12  ;;  %p1451_p11 = por %p1450_p6, %p1449_p2 }
  0x23   : > { %p1445_p1 = pneg %p1444_p9 }
  0x25   : > { %p1452_p13 = pnand %p1451_p11, %p1445_p1 }
  0x27   : > { %1455 = shalt.err (!%p1452_p13)
}
  0x28   : > { %s1621_s19 = smov 128   ;;  %s1622_s21 = smov 8  }
  0x29   : > { %1292 = dma.hbm_to_vmem [thread:$0]  (!%p1725_p10), %s2081_s3, 3200, %s1719_s15, [#allocation6], %s1621_s19, %s1621_s19, %s1622_s21  }
  0x2a   : > { %s1456_s10 = scalar_lea.hbm %s2082_s4, 256 }
  0x2b   : > { %p1457_p1 = scmp.ne.s32.totalorder %s2082_s4, %s1456_s10  ;;  %p1463_p0 = scmp.lt.u32.totalorder %s1456_s10, %s2082_s4 }
  0x2d   : > { %p1459_p2 = pnand %p1457_p1, %p1741_p12 }
  0x2f   : > { %p1460_p6 = pneg %p1459_p2 }
  0x31   : > { %p1465_p3 = pnand %p1463_p0, %p1460_p6 }
  0x33   : > { %1468 = shalt.err (!%p1465_p3)
}
  0x34   : > { %s1469_s15 = scalar_lea.vmem %s1729_s18, 256  ;;  %p1477_p11 = scmp.lt.s32.totalorder %s1729_s18, %s1729_s18 }
  0x35   : > { %p1470_p5 = scmp.ne.s32.totalorder %s1729_s18, %s1469_s15  ;;  %p1478_p13 = scmp.lt.s32.totalorder %s1469_s15, %s1469_s15 }
  0x37   : > { %p1472_p7 = pnand %p1470_p5, %p1741_p12  ;;  %p1479_p1 = por %p1478_p13, %p1477_p11 }
  0x39   : > { %p1473_p9 = pneg %p1472_p7 }
  0x3b   : > { %p1480_p2 = pnand %p1479_p1, %p1473_p9 }
  0x3d   : > { %1483 = shalt.err (!%p1480_p2)
}
  0x3e   : > { %1295 = dma.hbm_to_vmem [thread:$0]  (!%p1725_p10), %s2082_s4, 256, %s1729_s18, [#allocation6], %s1621_s19, %s1621_s19, %s1622_s21  }
  0x3f   : > { %s1484_s24 = scalar_lea.hbm %s2084_s6, 128 }
  0x40   : > { %p1485_p6 = scmp.ne.s32.totalorder %s2084_s6, %s1484_s24  ;;  %p1491_p5 = scmp.lt.u32.totalorder %s1484_s24, %s2084_s6 }
  0x42   : > { %p1487_p0 = pnand %p1485_p6, %p1741_p12 }
  0x44   : > { %p1488_p3 = pneg %p1487_p0 }
  0x46   : > { %p1493_p7 = pnand %p1491_p5, %p1488_p3 }
  0x48   : > { %1496 = shalt.err (!%p1493_p7)
}
  0x49   : > { %s1497_s15 = scalar_lea.vmem %s281_s20, 128  ;;  %p1505_p1 = scmp.lt.s32.totalorder %s281_s20, %s281_s20 }
  0x4a   : > { %p1498_p9 = scmp.ne.s32.totalorder %s281_s20, %s1497_s15  ;;  %p1506_p2 = scmp.lt.s32.totalorder %s1497_s15, %s1497_s15 }
  0x4c   : > { %p1500_p11 = pnand %p1498_p9, %p1741_p12  ;;  %p1507_p4 = por %p1506_p2, %p1505_p1 }
  0x4e   : > { %p1501_p13 = pneg %p1500_p11 }
  0x50   : > { %p1508_p8 = pnand %p1507_p4, %p1501_p13 }
  0x52   : > { %1511 = shalt.err (!%p1508_p8)
}
  0x53   : > { %1298 = dma.hbm_to_vmem [thread:$0]  (!%p1725_p10), %s2084_s6, 128, %s281_s20, [#allocation9]  }
  0x54   : > { %s1811_s26 = sadd.s32 1, %s1616_s30   ;;  %s33_s16 = sadd.s32 1, %s1612_s29 }
  0x55   : > { %s30_s12 = ssub.s32 %s1616_s30, %s1811_s26  ;;  %p40_p8 = scmp.ne.s32.totalorder %s1612_s29, %s1608_s28 }
  0x56   : > { %p31_p4 = scmp.eq.s32.totalorder %s30_s12, 0  ;;  %p41_p12 = scmp.eq.s32.totalorder %s1616_s30, 0 }
  0x57   : > { %p1310_p6 = scmp.lt.s32.totalorder %s1616_s30, 4  ;;  %p2099_p3 = scmp.eq.s32.totalorder %s1696_s9, 3 }
  0x58   : > { %s1821_s22 = scalar_select %p31_p4, %s1612_s29, %s33_s16  }
  0x59   : > { %p42_p0 = por %p41_p12, %p40_p8  ;;  %p1825_p5 = por %p2099_p3, %p40_p8 }
  0x5a   : > { %s294_s24 = sand.u32 1, %s1612_s29   ;;  %s1269_s25 = sshll.u32 %s1616_s30, 8 }
  0x5b   : > { %s1205_s20 = sshll.u32 %s294_s24, 4  ;;  %s1834_s17 = scalar_lea.hbm %s2078_s0, %s1269_s25 }
  0x5c   : > { %s298_s15 = scalar_lea.vmem [#allocation2], %s1205_s20  ;;  %p1836_p10 = pnand %p1310_p6, %p42_p0 }
  0x5d   : > { %s305_s18 = sshll.u32 %s298_s15, 4  ;;  %s1842_s12 = scalar_lea.sflag [#allocation3], %s294_s24  ;;  %s1840_s18 = int_to_ptr.vmem [resolvable:$true] %s305_s18 }
  0x5e   : > { %s1512_s16 = scalar_lea.hbm %s1834_s17, 256  ;;  %p1514_p9 = pneg %p1836_p10 }
  0x5f   : > { %p1513_p7 = scmp.ne.s32.totalorder %s1834_s17, %s1512_s16  ;;  %s1517_s10 = scalar_lea.hbm %s2078_s0, 1024 }
  0x60   : > { %p1518_p1 = scmp.lt.u32.totalorder %s1834_s17, %s2078_s0  ;;  %p1519_p2 = scmp.lt.u32.totalorder %s1517_s10, %s1512_s16 }
  0x61   : > { %p1515_p11 = pnand %p1514_p9, %p1513_p7  ;;  %p1521_p8 = scmp.lt.u32.totalorder %s1512_s16, %s1834_s17 }
  0x62   : > { %p1520_p4 = por %p1519_p2, %p1518_p1 }
  0x63   : > { %p1516_p13 = pneg %p1515_p11 }
  0x64   : > { %p1522_p12 = por %p1521_p8, %p1520_p4 }
  0x66   : > { %p1523_p6 = pnand %p1522_p12, %p1516_p13 }
  0x68   : > { %1526 = shalt.err (!%p1523_p6)
}
  0x69   : > { %s1527_s24 = scalar_lea.vmem %s1840_s18, 256  ;;  %s1623_s25 = smov [#allocation2]  }
  0x6a   : > { %p1528_p0 = scmp.ne.s32.totalorder %s1840_s18, %s1527_s24  ;;  %s1532_s20 = sshll.u32 %s1623_s25, 4  ;;  %s1533_s20 = int_to_ptr.vmem [resolvable:$false] %s1532_s20 }
  0x6b   : > { %s1534_s14 = scalar_lea.vmem %s1533_s20, 512  ;;  %p1535_p11 = scmp.lt.s32.totalorder %s1840_s18, %s1533_s20 }
  0x6c   : > { %p1530_p3 = pnand %p1528_p0, %p1514_p9  ;;  %p1536_p1 = scmp.lt.s32.totalorder %s1534_s14, %s1527_s24 }
  0x6e   : > { %p1531_p7 = pneg %p1530_p3  ;;  %p1537_p2 = por %p1536_p1, %p1535_p11 }
  0x70   : > { %p1538_p4 = pnand %p1537_p2, %p1531_p7 }
  0x72   : > { %1541 = shalt.err (!%p1538_p4)
}
  0x73   : > { %1302 = dma.hbm_to_vmem [thread:$0]  (!%p1836_p10), %s1834_s17, 256, %s1840_s18, %s1842_s12, %s1621_s19, %s1621_s19, %s1622_s21  }
  0x74   : > { %p2102_p9 = scmp.ne.s32.totalorder %s2096_s13, 0 }
  0x75   : > { %s1876_s16 = sand.u32 (!%p2102_p9), 1, %s1608_s28   ;;  %p2103_p13 = scmp.ne.s32.totalorder (!%p2102_p9), %s2093_s11, 0 }
  0x76   : > { %325 = sbr.rel (%p2102_p9) target bundleno = 1123 (0x463), region = 52  ;;  %s1209_s10 = sshll.u32 (!%p2102_p9), %s1876_s16, 4 }
  0x77   : > { %s328_s15 = scalar_lea.sflag (!%p2102_p9), [#allocation3], %s1876_s16  ;;  %s331_s24 = scalar_lea.vmem (!%p2102_p9), [#allocation2], %s1209_s10 }
  0x7d   : > { %1587 = dma.done.wait (%p2103_p13), %s328_s15, 256  }
  0x7e   : > { %1589 = vsyncadd (%p2103_p13), %s328_s15, 4294967040  ;;  %p2104_p8 = scmp.eq.s32.totalorder %s1696_s9, 0 }
  0x80   : > { %1591 = dma.done.wait (%p2104_p8), [#allocation6], 3456   ;;  %p2105_p10 = pmov %p2104_p8 }
  0x81   : > { %p2106_p12 = pmov %p2104_p8 }
  0x82   : > { %1593 = vsyncadd (%p2105_p10), [#allocation6], 4294963840 }
  0x83   : > { %1595 = dma.done.wait (%p2106_p12), [#allocation9], 128   ;;  %p2107_p6 = pmov %p2104_p8 }
  0x84   : > { %v1624_v0 = vmov 0   ;;  %vm434_vm0 = vcmask 1040384   ;;  %v1357_v1 = vld [vmem:[%s2080_s2 + $0x4] ss:$8 sps:$4 sm:$0xff]   ;;  %v1359_v2 = vld [vmem:[%s2080_s2] ss:$8 sps:$4 sm:$0xff]   ;;  %v405_v40 = vlaneseq }
  0x85   : > { %1597 = vsyncadd (%p2107_p6), [#allocation9], 4294967168  ;;  %475 = vmatprep.mubr.bf16.mxu1 %v1624_v0  ;;  %889 = vmatprep.mubr.bf16.mxu0 %v1624_v0  ;;  %v403_v3 = vld [vmem:[%s2080_s2 + $0x10] sm:$0x11]  ;;  %v436_v4 = vsel %vm434_vm0, 65535, %v1624_v0  ;;  %v388_v8 = vld [vmem:[%s331_s24 + $0x8] sm:$0xff] }
  0x86   : > { %443 = vmatprep.subr.bf16.mxu1 %v1357_v1  ;;  %v1218_v5 = vcombine.high %v403_v3, %v403_v3  ;;  %v1217_v6 = vcombine.low %v403_v3, %v403_v3  ;;  %v387_v7 = vld [vmem:[%s331_s24] sm:$0xff]  ;;  %vm430_vm1 = vcmask 138240   ;;  %vm761_vm2 = vcmask 1043456   ;;  %v391_v43 = vld [vmem:[#allocation8] ss:$4 sm:$0x3] }
  0x87   : > { %444 = vmatpush1.bf16.msra.mxu1 %v1359_v2  ;;  %v400_v11 = vpack.c.bf16 %v388_v8, %v387_v7  ;;  %v1364_v12 = vld [vmem:[#allocation5 + $0x4] ss:$8 sps:$4 sm:$0xff]   ;;  %v1362_v13 = vld [vmem:[#allocation5] ss:$8 sps:$4 sm:$0xff]   ;;  %v1367_v14 = vld [vmem:[#allocation5 + $0x14] ss:$8 sps:$4 sm:$0xff]  }
  0x88   : > { %v441_v9 = vand.u32 %v1218_v5, %v436_v4  ;;  %v438_v10 = vand.u32 %v1217_v6, %v436_v4  ;;  %v1365_v15 = vld [vmem:[#allocation5 + $0x10] ss:$8 sps:$4 sm:$0xff]   ;;  %v1370_v16 = vld [vmem:[#allocation5 + $0x24] ss:$8 sps:$4 sm:$0xff]   ;;  %v1368_v17 = vld [vmem:[#allocation5 + $0x20] ss:$8 sps:$4 sm:$0xff]  }
  0x89   : > { %v1373_v18 = vld [vmem:[#allocation5 + $0x34] ss:$8 sps:$4 sm:$0xff]   ;;  %v1371_v19 = vld [vmem:[#allocation5 + $0x30] ss:$8 sps:$4 sm:$0xff]   ;;  %v1376_v20 = vld [vmem:[#allocation5 + $0x44] ss:$8 sps:$4 sm:$0xff]  }
  0x8a   : > { %445 = vmatprep.subr.bf16.mxu1 %v441_v9  ;;  %v1374_v21 = vld [vmem:[#allocation5 + $0x40] ss:$8 sps:$4 sm:$0xff]   ;;  %v1379_v22 = vld [vmem:[#allocation5 + $0x54] ss:$8 sps:$4 sm:$0xff]   ;;  %v1377_v23 = vld [vmem:[#allocation5 + $0x50] ss:$8 sps:$4 sm:$0xff]  }
  0x8b   : > { %446 = vmatpush1.bf16.msra.mxu1 %v438_v10  ;;  %v1382_v24 = vld [vmem:[#allocation5 + $0x64] ss:$8 sps:$4 sm:$0xff]   ;;  %v1380_v25 = vld [vmem:[#allocation5 + $0x60] ss:$8 sps:$4 sm:$0xff]   ;;  %v1385_v26 = vld [vmem:[#allocation5 + $0x74] ss:$8 sps:$4 sm:$0xff]  }
  0x8c   : > { %768 = vmatprep.subr.bf16.mxu1 %v1364_v12  ;;  %v1383_v27 = vld [vmem:[#allocation5 + $0x70] ss:$8 sps:$4 sm:$0xff]   ;;  %v1388_v28 = vld [vmem:[#allocation5 + $0x84] ss:$8 sps:$4 sm:$0xff]   ;;  %v1386_v29 = vld [vmem:[#allocation5 + $0x80] ss:$8 sps:$4 sm:$0xff]  }
  0x8d   : > { %v1391_v30 = vld [vmem:[#allocation5 + $0x94] ss:$8 sps:$4 sm:$0xff]   ;;  %v1389_v31 = vld [vmem:[#allocation5 + $0x90] ss:$8 sps:$4 sm:$0xff]   ;;  %v1394_v32 = vld [vmem:[#allocation5 + $0xa4] ss:$8 sps:$4 sm:$0xff]  }
  0x8e   : > { %1219 = vmatmul.mubr.msk.bf16.vlgmr.msra.gmra.mrb[0].mxu1 %vm430_vm1, %v400_v11  ;;  %v1392_v33 = vld [vmem:[#allocation5 + $0xa0] ss:$8 sps:$4 sm:$0xff]   ;;  %v1397_v34 = vld [vmem:[#allocation5 + $0xb4] ss:$8 sps:$4 sm:$0xff]   ;;  %v1395_v35 = vld [vmem:[#allocation5 + $0xb0] ss:$8 sps:$4 sm:$0xff]  }
  0x8f   : > { %769 = vmatpush1.bf16.msra.mxu1 %v1362_v13  ;;  %v621_v36 = vld [vmem:[#allocation5 + $0xc0] sm:$0xff]  ;;  %v1906_v41 = vshrl.u32 %v405_v40, 7  ;;  %vm493_vm3 = vcmask 588800   ;;  %vm847_vm4 = vcmask 1044480   ;;  %vm848_vm5 = vcmask 1045504   ;;  %s1271_s25 = smul.u32 48, %s1876_s16 }
  0x90   : > { %770 = vmatprep.subr.bf16.mxu1 %v1367_v14  ;;  %v1245_v37 = vcombine.high %v621_v36, %v621_v36  ;;  %v1244_v38 = vcombine.low %v621_v36, %v621_v36  ;;  %p381_p0 = scmp.lt.s32.totalorder %s1696_s9, 3  ;;  %vm843_vm6 = vcmask 89088   ;;  %s1272_s17 = smul.u32 768, %s1696_s9 }
  0x91   : > { %v1909_v42 = vsub.s32 0, %v1906_v41  ;;  %v1912_v44 = vsub.s32 1, %v1906_v41  ;;  %s1958_s20 = scalar_lea.vmem [#allocation10], %s1271_s25  ;;  %s1072_s25 = scalar_lea.sflag [#allocation4], %s1876_s16 }
  0x92   : > { %v763_v39 = vsel %vm761_vm2, %v1244_v38, 0  ;;  %s382_s14 = scalar_select %p381_p0, %s1696_s9, 3 }
  0x93   : > { %771 = vmatpush1.bf16.msra.mxu1 %v1365_v15  ;;  %v408_v45 = vrot.slane %v391_v43, %v1909_v42  ;;  %v412_v46 = vrot.slane %v391_v43, %v1912_v44  ;;  %s1085_s21 = sshll.u32 %s1958_s20, 4  ;;  %s2033_s12 = scalar_lea.hbm %s2086_s8, %s1272_s17  ;;  %s2028_s21 = int_to_ptr.vmem [resolvable:$true] %s1085_s21 }
  0x94   : > { %772 = vmatprep.subr.bf16.mxu1 %v1370_v16  ;;  %s1270_s10 = sshll.u32 %s382_s14, 4  ;;  %s1542_s14 = scalar_lea.vmem %s2028_s21, 768 }
  0x95   : > { %s385_s11 = scalar_lea.vmem %s2079_s1, %s1270_s10  ;;  %p1543_p3 = scmp.ne.s32.totalorder %s2028_s21, %s1542_s14 }
  0x96   : > { %s1627_s9 = smov [#allocation10]  }
  0x97   : > { %773 = vmatpush1.bf16.msra.mxu1 %v1368_v17  ;;  %p1544_p7 = pnand %p1543_p3, %p1825_p5  ;;  %s1546_s10 = sshll.u32 %s1627_s9, 4  ;;  %s1547_s10 = int_to_ptr.vmem [resolvable:$false] %s1546_s10 }
  0x98   : > { %774 = vmatprep.subr.bf16.mxu1 %v1373_v18  ;;  %s1548_s15 = scalar_lea.vmem %s1547_s10, 1536  ;;  %p1549_p1 = scmp.lt.s32.totalorder %s2028_s21, %s1547_s10 }
  0x99   : > { %p1545_p11 = pneg %p1544_p7  ;;  %p1550_p2 = scmp.lt.s32.totalorder %s1548_s15, %s1542_s14 }
  0x9b   : > { %775 = vmatpush1.bf16.msra.mxu1 %v1371_v19  ;;  %p1551_p4 = por %p1550_p2, %p1549_p1 }
  0x9c   : > { %776 = vmatprep.subr.bf16.mxu1 %v1376_v20 }
  0x9d   : > { %p1552_p9 = pnand %p1551_p4, %p1545_p11 }
  0x9f   : > { %777 = vmatpush1.bf16.msra.mxu1 %v1374_v21 }
  0xa0   : > { %778 = vmatprep.subr.bf16.mxu1 %v1379_v22 }
  0xa3   : > { %779 = vmatpush1.bf16.msra.mxu1 %v1377_v23 }
  0xa4   : > { %780 = vmatprep.subr.bf16.mxu1 %v1382_v24 }
  0xa7   : > { %781 = vmatpush1.bf16.msra.mxu1 %v1380_v25 }
  0xa8   : > { %782 = vmatprep.subr.bf16.mxu1 %v1385_v26 }
  0xab   : > { %783 = vmatpush1.bf16.msra.mxu1 %v1383_v27 }
  0xac   : > { %784 = vmatprep.subr.bf16.mxu1 %v1388_v28 }
  0xaf   : > { %785 = vmatpush1.bf16.msra.mxu1 %v1386_v29 }
  0xb0   : > { %786 = vmatprep.subr.bf16.mxu1 %v1391_v30 }
  0xb3   : > { %787 = vmatpush1.bf16.msra.mxu1 %v1389_v31 }
  0xb4   : > { %788 = vmatprep.subr.bf16.mxu1 %v1394_v32 }
  0xb7   : > { %789 = vmatpush1.bf16.msra.mxu1 %v1392_v33 }
  0xb8   : > { %790 = vmatprep.subr.bf16.mxu1 %v1397_v34 }
  0xbb   : > { %791 = vmatpush1.bf16.msra.mxu1 %v1395_v35 }
  0xbc   : > { %1246 = vmatprep.subr.msk.bf16.mxu1 %vm761_vm2, %v1245_v37 }
  0xbf   : > { %793 = vmatpush1.bf16.msra.mxu1 %v763_v39 }
 0x161   : > { %v477_v47 = vpop.f32.mrb[0].mxu1 }
 0x162   : > { %v1916_v48 = vadd.f32 %v477_v47, %v408_v45  ;;  %v479_v49 = vpop.f32.mrb[1].mxu1  ;;  %v1625_v47 = vmov 1966171168  }
 0x163   : > { %v1918_v50 = vadd.f32 %v479_v49, %v412_v46  ;;  %v481_v51 = vpop.f32.mrb[2].mxu1  ;;  %v542_v49 = vunpack.c.l.s4 %v1625_v47 }
 0x164   : > { %v1920_v52 = vadd.f32 %v481_v51, %v408_v45  ;;  %v483_v53 = vpop.f32.mrb[3].mxu1  ;;  %v506_v56 = vmul.f32 %v1916_v48, %v1916_v48 }
 0x165   : > { %v507_v54 = vmul.f32 %v1918_v50, %v1918_v50  ;;  %v1924_v55 = vadd.f32 %v483_v53, %v412_v46  ;;  %v494_v59 = vsel %vm493_vm3, %v1918_v50, 0.0  ;;  %v543_v51 = vunpack.c.0.s8 %v542_v49  ;;  %v1404_v49 = vld [vmem:[%s2083_s5 + $0x8] sm:$0xff]  }
 0x166   : > { %v486_v57 = vadd.f32 %v1920_v52, %v1916_v48  ;;  %v508_v58 = vmul.f32 %v1920_v52, %v1920_v52 }
 0x167   : > { %v495_v60 = vsel %vm493_vm3, %v1924_v55, 0.0  ;;  %v509_v61 = vmul.f32 %v1924_v55, %v1924_v55  ;;  %v517_v2 = vsel %vm493_vm3, %v507_v54, 0.0 }
 0x168   : > { %v487_v62 = vrot.slane %v486_v57, 4  ;;  %v510_v63 = vadd.f32 %v508_v58, %v506_v56  ;;  %v496_v1 = vadd.f32 %v495_v60, %v494_v59 }
 0x169   : > { %v518_v3 = vsel %vm493_vm3, %v509_v61, 0.0 }
 0x16a   : > { %v488_v4 = vadd.f32 %v487_v62, %v486_v57  ;;  %v511_v5 = vrot.slane %v510_v63, 4  ;;  %v497_v6 = vrot.slane %v496_v1, 4  ;;  %v519_v7 = vadd.f32 %v518_v3, %v517_v2 }
 0x16c   : > { %v489_v8 = vrot.slane %v488_v4, 2  ;;  %v512_v9 = vadd.f32 %v511_v5, %v510_v63  ;;  %v498_v10 = vadd.f32 %v497_v6, %v496_v1  ;;  %v520_v11 = vrot.slane %v519_v7, 4 }
 0x16e   : > { %v490_v12 = vadd.f32 %v489_v8, %v488_v4  ;;  %v513_v13 = vrot.slane %v512_v9, 2  ;;  %v499_v14 = vrot.slane %v498_v10, 2  ;;  %v521_v15 = vadd.f32 %v520_v11, %v519_v7 }
 0x170   : > { %v491_v16 = vrot.slane %v490_v12, 1  ;;  %v514_v17 = vadd.f32 %v513_v13, %v512_v9  ;;  %v500_v18 = vadd.f32 %v499_v14, %v498_v10  ;;  %v522_v19 = vrot.slane %v521_v15, 2  ;;  %v1400_v13 = vld [vmem:[#allocation7 + $0x4] ss:$8 sps:$4 sm:$0x3f]  }
 0x171   : > { %v1626_v14 = vmov 65535  }
 0x172   : > { %v492_v20 = vadd.f32 %v491_v16, %v490_v12  ;;  %v515_v21 = vrot.slane %v514_v17, 1  ;;  %v501_v22 = vrot.slane %v500_v18, 1  ;;  %v523_v23 = vadd.f32 %v522_v19, %v521_v15  ;;  %v1402_v16 = vld [vmem:[#allocation7] ss:$8 sps:$4 sm:$0x3f]  }
 0x173   : > { %v849_v15 = vsel %vm847_vm4, 4294967295, %v1626_v14 }
 0x174   : > { %v504_v24 = vmul.f32 0.0625, %v492_v20  ;;  %v516_v25 = vadd.f32 %v515_v21, %v514_v17  ;;  %v502_v26 = vadd.f32 %v501_v22, %v500_v18  ;;  %v524_v27 = vrot.slane %v523_v23, 1  ;;  %v398_v20 = vld [vmem:[%s2085_s7] ss:$2 sm:$0x3] }
 0x175   : > { %v850_v17 = vsel %vm848_vm5, %v849_v15, 0  ;;  %v626_v21 = vrot.slane %v398_v20, %v1909_v42  ;;  %v630_v22 = vrot.slane %v398_v20, %v1912_v44 }
 0x176   : > { %v526_v28 = vmul.f32 0.0625, %v516_v25  ;;  %v528_v29 = vmul.f32 %v504_v24, %v504_v24  ;;  %v559_v30 = vsub.f32 %v1920_v52, %v504_v24  ;;  %v505_v31 = vmul.f32 0.0625, %v502_v26 }
 0x177   : > { %v525_v32 = vadd.f32 %v524_v27, %v523_v23  ;;  %v557_v33 = vsub.f32 %v1916_v48, %v504_v24  ;;  %v546_v48 = vsub.s32 %v543_v51, %v1906_v41  ;;  %v855_v18 = vand.u32 %v1400_v13, %v850_v17  ;;  %v1405_v51 = vld [vmem:[%s2083_s5 + $0x10] sm:$0xff]  }
 0x178   : > { %v530_v34 = vsub.f32 %v526_v28, %v528_v29  ;;  %v529_v35 = vmul.f32 %v505_v31, %v505_v31  ;;  %v558_v36 = vsub.f32 %v1918_v50, %v505_v31  ;;  %v560_v37 = vsub.f32 %v1924_v55, %v505_v31  ;;  %v393_v50 = vld [vmem:[#allocation8 + $0x1] ss:$4 sm:$0x3]  ;;  %v395_v55 = vld [vmem:[#allocation8 + $0x2] ss:$4 sm:$0x3] }
 0x179   : > { %v527_v38 = vmul.f32 0.0625, %v525_v32  ;;  %v584_v61 = vrot.slane %v395_v55, %v1912_v44  ;;  %v580_v62 = vrot.slane %v395_v55, %v1909_v42  ;;  %v852_v19 = vand.u32 %v1402_v16, %v850_v17  ;;  %857 = vmatprep.subr.bf16.mxu0 %v855_v18  ;;  %v1413_v55 = vld [vmem:[%s2083_s5 + $0x50] sm:$0xff]  }
 0x17a   : > { %v532_v39 = vmax.f32 %v530_v34, 0.0 }
 0x17b   : > { %v531_v40 = vsub.f32 %v527_v38, %v529_v35  ;;  %858 = vmatpush1.bf16.msra.mxu0 %v852_v19  ;;  %v389_v35 = vld [vmem:[%s385_s11] sm:$0xff] }
 0x17c   : > { %v534_v43 = vadd.f32 1e-05, %v532_v39  ;;  %1016 = vmatprep.subr.bf16.mxu0 %v1624_v0 }
 0x17d   : > { %v533_v45 = vmax.f32 %v531_v40, 0.0 }
 0x17e   : > { %1416 = vrsqrt.f32 %v534_v43 }
 0x17f   : > { %v535_v46 = vadd.f32 1e-05, %v533_v45 }
 0x181   : > { %1418 = vrsqrt.f32 %v535_v46  ;;  %v1403_v46 = vld [vmem:[%s2083_s5] sm:$0xff]  }
 0x188   : > { %v1417_v52 = vpop.eup %1416 }
 0x18b   : > { %v1419_v53 = vpop.eup %1418 }
 0x18c   : > { %v540_v54 = vcombine.low %v1417_v52, %v1419_v53  ;;  %v1406_v52 = vld [vmem:[%s2083_s5 + $0x18] sm:$0xff]   ;;  %v1408_v53 = vld [vmem:[%s2083_s5 + $0x28] sm:$0xff]  }
 0x18e   : > { %v547_v56 = vrot.slane %v540_v54, %v546_v48  ;;  %v1409_v54 = vld [vmem:[%s2083_s5 + $0x30] sm:$0xff]  }
 0x190   : > { %v554_v57 = vrot.slane %v547_v56, %v546_v48  ;;  %v1407_v48 = vld [vmem:[%s2083_s5 + $0x20] sm:$0xff]   ;;  %v1410_v56 = vld [vmem:[%s2083_s5 + $0x38] sm:$0xff]  }
 0x192   : > { %v556_v58 = vmul.f32 %v554_v57, %v393_v50  ;;  %v1411_v50 = vld [vmem:[%s2083_s5 + $0x40] sm:$0xff]   ;;  %v1412_v57 = vld [vmem:[%s2083_s5 + $0x48] sm:$0xff]  }
 0x194   : > { %v565_v59 = vrot.slane %v556_v58, %v1909_v42  ;;  %v569_v60 = vrot.slane %v556_v58, %v1912_v44  ;;  %v1414_v58 = vld [vmem:[%s2083_s5 + $0x58] sm:$0xff]  }
 0x196   : > { %v573_v63 = vmul.f32 %v569_v60, %v558_v36  ;;  %v575_v1 = vmul.f32 %v569_v60, %v560_v37  ;;  %v572_v2 = vmul.f32 %v565_v59, %v557_v33  ;;  %v574_v3 = vmul.f32 %v565_v59, %v559_v30  ;;  %v390_v37 = vld [vmem:[%s385_s11 + $0x8] sm:$0xff]  ;;  %v1415_v59 = vld [vmem:[%s2083_s5 + $0x60] ss:$0 sps:$4 sm:$0xff]  }
 0x197   : > { %v1014_v60 = vsel %vm761_vm2, %v1415_v59, 0 }
 0x198   : > { %v590_v41 = vadd.f32 %v584_v61, %v575_v1  ;;  %v588_v4 = vadd.f32 %v584_v61, %v573_v63  ;;  %v587_v5 = vadd.f32 %v580_v62, %v572_v2  ;;  %v589_v6 = vadd.f32 %v580_v62, %v574_v3  ;;  %v397_v61 = vld [vmem:[#allocation8 + $0x3] ss:$4 sm:$0x3] }
 0x199   : > { %v828_v62 = vrot.slane %v397_v61, %v1909_v42  ;;  %v832_v63 = vrot.slane %v397_v61, %v1912_v44  ;;  %v1251_v42 = vld [vmem:[%s2085_s7 + $0x1] ss:$0 sm:$0xff] }
 0x19a   : > { %v592_v7 = vmax.f32 %v588_v4, 0.0  ;;  %v594_v8 = vmax.f32 %v590_v41, 0.0  ;;  %v591_v9 = vmax.f32 %v587_v5, 0.0  ;;  %v593_v10 = vmax.f32 %v589_v6, 0.0 }
 0x19c   : > { %v596_v11 = vpack.c.bf16 %v594_v8, %v592_v7  ;;  %v595_v12 = vpack.c.bf16 %v593_v10, %v591_v9 }
 0x19e   : > { %1247 = vmatprep.mubr.msk.bf16.mxu1 %vm493_vm3, %v596_v11 }
 0x19f   : > { %801 = vmatmul.mubr.bf16.vlgmr.msra.gmra.mrb[4].mxu1 %v595_v12 }
 0x272   : > { %v802_v23 = vpop.f32.mrb[4].mxu1 }
 0x273   : > { %v803_v24 = vadd.f32 %v802_v23, %v626_v21  ;;  %v804_v25 = vpop.f32.mrb[5].mxu1 }
 0x274   : > { %v805_v26 = vadd.f32 %v804_v25, %v630_v22  ;;  %v806_v27 = vpop.f32.mrb[6].mxu1 }
 0x275   : > { %1067 = vst [vmem:[%s1958_s20 + $0x8] sm:$0xff] %v803_v24  ;;  %v807_v28 = vadd.f32 %v806_v27, %v626_v21  ;;  %v808_v29 = vpop.f32.mrb[7].mxu1 }
 0x276   : > { %v811_v30 = vmul.f32 0.5, %v805_v26  ;;  %1068 = vst [vmem:[%s1958_s20 + $0x10] sm:$0xff] %v805_v26  ;;  %v809_v31 = vadd.f32 %v808_v29, %v630_v22 }
 0x277   : > { %1069 = vst [vmem:[%s1958_s20 + $0x20] sm:$0xff] %v807_v28 }
 0x278   : > { %v813_v32 = vmul.f32 1.442695, %v811_v30  ;;  %v812_v33 = vmul.f32 0.5, %v809_v31  ;;  %1070 = vst [vmem:[%s1958_s20 + $0x28] sm:$0xff] %v809_v31 }
 0x27a   : > { %1420 = vpow2.f32 %v813_v32  ;;  %v815_v34 = vmul.f32 1.442695, %v812_v33 }
 0x27c   : > { %1422 = vpow2.f32 %v815_v34 }
 0x284   : > { %v1421_v36 = vpop.eup %1420 }
 0x285   : > { %v817_v38 = vmul.f32 %v1421_v36, %v389_v35 }
 0x286   : > { %v1423_v39 = vpop.eup %1422 }
 0x287   : > { %v818_v40 = vmul.f32 %v1423_v39, %v390_v37  ;;  %v819_v43 = vadd.f32 %v817_v38, %v803_v24 }
 0x289   : > { %v820_v45 = vadd.f32 %v818_v40, %v807_v28 }
 0x28b   : > { %v821_v47 = vpack.c.bf16 %v820_v45, %v819_v43 }
 0x28d   : > { %1250 = vmatmul.mubr.msk.bf16.vlgmr.msra.gmra.mrb[0].mxu0 %vm843_vm6, %v821_v47 }
 0x28e   : > { %1017 = vmatpush1.bf16.msra.mxu0 %v1403_v46 }
 0x28f   : > { %1018 = vmatprep.subr.bf16.mxu0 %v1624_v0 }
 0x292   : > { %1019 = vmatpush1.bf16.msra.mxu0 %v1404_v49 }
 0x293   : > { %1020 = vmatprep.subr.bf16.mxu0 %v1624_v0 }
 0x296   : > { %1021 = vmatpush1.bf16.msra.mxu0 %v1405_v51 }
 0x297   : > { %1022 = vmatprep.subr.bf16.mxu0 %v1624_v0 }
 0x29a   : > { %1023 = vmatpush1.bf16.msra.mxu0 %v1406_v52 }
 0x29b   : > { %1024 = vmatprep.subr.bf16.mxu0 %v1624_v0 }
 0x29e   : > { %1025 = vmatpush1.bf16.msra.mxu0 %v1407_v48 }
 0x29f   : > { %1026 = vmatprep.subr.bf16.mxu0 %v1624_v0 }
 0x2a2   : > { %1027 = vmatpush1.bf16.msra.mxu0 %v1408_v53 }
 0x2a3   : > { %1028 = vmatprep.subr.bf16.mxu0 %v1624_v0 }
 0x2a6   : > { %1029 = vmatpush1.bf16.msra.mxu0 %v1409_v54 }
 0x2a7   : > { %1030 = vmatprep.subr.bf16.mxu0 %v1624_v0 }
 0x2aa   : > { %1031 = vmatpush1.bf16.msra.mxu0 %v1410_v56 }
 0x2ab   : > { %1032 = vmatprep.subr.bf16.mxu0 %v1624_v0 }
 0x2ae   : > { %1033 = vmatpush1.bf16.msra.mxu0 %v1411_v50 }
 0x2af   : > { %1034 = vmatprep.subr.bf16.mxu0 %v1624_v0 }
 0x2b2   : > { %1035 = vmatpush1.bf16.msra.mxu0 %v1412_v57 }
 0x2b3   : > { %1036 = vmatprep.subr.bf16.mxu0 %v1624_v0 }
 0x2b6   : > { %1037 = vmatpush1.bf16.msra.mxu0 %v1413_v55 }
 0x2b7   : > { %1038 = vmatprep.subr.bf16.mxu0 %v1624_v0 }
 0x2ba   : > { %1039 = vmatpush1.bf16.msra.mxu0 %v1414_v58 }
 0x2bb   : > { %1040 = vmatprep.subr.bf16.mxu0 %v1624_v0 }
 0x2be   : > { %1041 = vmatpush1.bf16.msra.mxu0 %v1014_v60 }
 0x360   : > { %v891_v1 = vpop.f32.mrb[0].mxu0 }
 0x361   : > { %v892_v2 = vadd.f32 %v891_v1, %v828_v62  ;;  %v893_v3 = vpop.f32.mrb[1].mxu0 }
 0x362   : > { %v894_v41 = vadd.f32 %v893_v3, %v832_v63  ;;  %v895_v4 = vpop.f32.mrb[2].mxu0 }
 0x363   : > { %v896_v5 = vadd.f32 %v895_v4, %v828_v62  ;;  %v897_v6 = vpop.f32.mrb[3].mxu0  ;;  %v900_v7 = vmax.f32 %v892_v2, 0.0 }
 0x364   : > { %v898_v0 = vadd.f32 %v897_v6, %v832_v63  ;;  %v901_v9 = vmax.f32 %v894_v41, 0.0 }
 0x365   : > { %v902_v8 = vmax.f32 %v896_v5, 0.0 }
 0x366   : > { %v903_v10 = vmax.f32 %v898_v0, 0.0 }
 0x367   : > { %v904_v11 = vpack.c.bf16 %v902_v8, %v900_v7 }
 0x368   : > { %v905_v12 = vpack.c.bf16 %v903_v10, %v901_v9 }
 0x36a   : > { %1265 = vmatprep.mubr.msk.bf16.mxu0 %vm493_vm3, %v905_v12 }
 0x36b   : > { %1049 = vmatmul.mubr.bf16.vlgmr.msra.gmra.mrb[4].mxu0 %v904_v11 }
 0x43e   : > { %v1050_v44 = vpop.f32.mrb[4].mxu0 }
 0x43f   : > { %v1051_v13 = vadd.f32 %v1251_v42, %v1050_v44  ;;  %v1052_v14 = vpop.f32.mrb[5].mxu0 }
 0x440   : > { %v1053_v15 = vpop.f32.mrb[6].mxu0 }
 0x441   : > { %v1057_v16 = vmul.f32 0.5, %v1051_v13  ;;  %v1054_v17 = vadd.f32 %v1251_v42, %v1053_v15  ;;  %v1055_v18 = vpop.f32.mrb[7].mxu0 }
 0x443   : > { %1424 = vtanh.f32 %v1057_v16  ;;  %v1058_v19 = vmul.f32 0.5, %v1054_v17 }
 0x445   : > { %1426 = vtanh.f32 %v1058_v19 }
 0x44d   : > { %v1425_v20 = vpop.eup %1424 }
 0x44e   : > { %v1061_v21 = vadd.f32 1.0, %v1425_v20 }
 0x44f   : > { %v1427_v22 = vpop.eup %1426 }
 0x450   : > { %v1063_v23 = vmul.f32 0.5, %v1061_v21  ;;  %v1062_v24 = vadd.f32 1.0, %v1427_v22 }
 0x452   : > { %1065 = vst [vmem:[%s1958_s20] sm:$0xff] %v1063_v23  ;;  %v1064_v25 = vmul.f32 0.5, %v1062_v24 }
 0x454   : > { %1066 = vst [vmem:[%s1958_s20 + $0x18] sm:$0xff] %v1064_v25 }
 0x455   : > { %1555 = shalt.err (!%p1552_p9)
}
 0x456   : > { %s1556_s20 = scalar_lea.hbm %s2033_s12, 768  ;;  %s1560_s13 = scalar_lea.hbm %s2086_s8, 3072 }
 0x457   : > { %p1557_p13 = scmp.ne.s32.totalorder %s2033_s12, %s1556_s20  ;;  %p1561_p12 = scmp.lt.u32.totalorder %s2033_s12, %s2086_s8 }
 0x458   : > { %p1562_p6 = scmp.lt.u32.totalorder %s1560_s13, %s1556_s20  ;;  %p1564_p3 = scmp.lt.u32.totalorder %s1556_s20, %s2033_s12 }
 0x459   : > { %p1558_p8 = pnand %p1557_p13, %p1825_p5 }
 0x45a   : > { %p1563_p0 = por %p1562_p6, %p1561_p12 }
 0x45b   : > { %p1559_p10 = pneg %p1558_p8 }
 0x45c   : > { %p1565_p7 = por %p1564_p3, %p1563_p0 }
 0x45e   : > { %p1566_p11 = pnand %p1565_p7, %p1559_p10 }
 0x460   : > { %1569 = shalt.err (!%p1566_p11)
}
 0x461   : > { %s1628_s18 = smov 384   ;;  %s1629_s27 = smov 24  }
 0x462   : > { %1287 = dma.vmem_to_hbm [thread:$0]  (%p1825_p5), %s2028_s21, 768, %s2033_s12, %s1072_s25, %s1628_s18, %s1628_s18, %s1629_s27  }
 0x463 PF: > { %s2108_s14 = sld [smem:[#allocation15_spill]]  ;;  %s2109_s9 = sld [smem:[#allocation16_spill]] }
 0x464   : > { %p1314_p1 = scmp.ge.s32.totalorder %s1616_s30, 2 }
 0x469   : > { %s1100_s10 = sand.u32 1, %s2108_s14   ;;  %p2110_p2 = scmp.ne.s32.totalorder %s2109_s9, 0 }
 0x46a   : > { %s1101_s15 = scalar_lea.sflag [#allocation4], %s1100_s10 }
 0x46b   : > { %p1304_p4 = pnand %p1314_p1, %p2110_p2 }
 0x46d   : > { %1599 = dma.done.wait (!%p1304_p4), %s1101_s15, 768  }
 0x46e   : > { %1601 = vsyncadd (!%p1304_p4), %s1101_s15, 4294966528  ;;  %p23_p9 = scmp.ge.s32.totalorder %s1811_s26, 6   ;;  %s2111_s27 = smov %s1608_s28 }
 0x46f   : > { %s2112_s28 = smov %s1612_s29  ;;  %s2113_s29 = smov %s1821_s22 }
 0x470   : > { %s2114_s30 = smov %s1811_s26  ;;  %25 = sbr.rel (!%p23_p9) target bundleno = 7 (0x7), region = 115 }
 0x477   :  { %1106 = vsyncpa [#allocation3], 1 }
 0x478   :  { %1108 = vsyncpa [#allocation3 + $0x1], 1 }
 0x479   :  { %1109 = vsyncpa [#allocation6], 1 }
 0x47a   :  { %1110 = vsyncpa [#allocation9], 1 }
 0x47b   :  { %1111 = vsyncpa [#allocation4], 1 }
 0x47c   :  { %1113 = vsyncpa [#allocation4 + $0x1], 1 }

</bundles_post_ra>
